<compile_context>
chip_gen: v5e
topology: v5e:2x2
jax: 0.10.0
libtpu: 0.0.40
codegen_flags: <defaults>
</compile_context>

<pallas_src>
import functools

import numpy as np
import jax
import jax.numpy as jnp
from jax.experimental import pallas as pl
from jax.experimental.pallas import tpu as pltpu

_A = 10.0
_TWO_PI = 2.0 * np.pi

_LANES = 128
_SUBLANES = 8


def _round_up(a: int, b: int) -> int:
    return (a + b - 1) // b * b


# -----------------------------------------------------------------------------
# Scalar (module-faithful) forward: one (x, y) pair -> scalar objective.
# -----------------------------------------------------------------------------
def _rastrigin2d_scalar_kernel(xy_ref, o_ref):
    # xy_ref: SMEM f32[2] = [x, y];  o_ref: VMEM f32[1, 1].
    A = jnp.float32(_A)
    two_pi = jnp.float32(_TWO_PI)
    # Scalar loads from SMEM, splat to a (1,1) vreg so cos() runs on the EUP
    # (the scalar core has no transcendental unit).  Keeping the output in a
    # (1,1) VMEM block: this path is launch-overhead bound either way.
    x = jnp.full((1, 1), xy_ref[0], jnp.float32)
    y = jnp.full((1, 1), xy_ref[1], jnp.float32)
    o_ref[...] = (
        2.0 * A
        + (x * x - A * jnp.cos(two_pi * x))
        + (y * y - A * jnp.cos(two_pi * y))
    )


def _optim2d_pallas(x, y):
    # Pack both scalars into a single SMEM input (one array, one scalar path).
    xy = jnp.stack(
        [jnp.asarray(x, jnp.float32).reshape(()),
         jnp.asarray(y, jnp.float32).reshape(())]
    )  # (2,)
    out = pl.pallas_call(
        _rastrigin2d_scalar_kernel,
        out_shape=jax.ShapeDtypeStruct((1, 1), jnp.float32),
        in_specs=[pl.BlockSpec(memory_space=pltpu.SMEM)],
        out_specs=pl.BlockSpec(memory_space=pltpu.VMEM),
    )(xy)
    return out[0, 0]  # 0-dim scalar, like the PyTorch module


@jax.custom_vjp
def optim2d_forward(x, y):
    """Rastrigin objective for scalar parameters x, y (Pallas forward)."""
    return _optim2d_pallas(x, y)


def _optim2d_fwd(x, y):
    xf = jnp.asarray(x, jnp.float32)
    yf = jnp.asarray(y, jnp.float32)
    return _optim2d_pallas(xf, yf), (xf, yf)


def _optim2d_bwd(res, g):
    # Analytic VJP so jax.grad / optimizers work through the Pallas forward.
    x, y = res
    A = jnp.float32(_A)
    two_pi = jnp.float32(_TWO_PI)
    dx = g * (2.0 * x + A * two_pi * jnp.sin(two_pi * x))
    dy = g * (2.0 * y + A * two_pi * jnp.sin(two_pi * y))
    return dx, dy


optim2d_forward.defvjp(_optim2d_fwd, _optim2d_bwd)

# jit the whole wrapper: pack + pallas_call + unpack become one executable.
optim2d = jax.jit(optim2d_forward)


# -----------------------------------------------------------------------------
# Batched (population) evaluation: N candidate (x, y) points -> N objectives.
# xs and ys are separate inputs (no pre-kernel stack), each reshaped to a
# sublane/lane-dense (rows, 128) layout and tiled as (TR, 128) blocks.
# Output has the same dense layout -> unmasked vst, no reduce.
# -----------------------------------------------------------------------------
def _rastrigin2d_batched_kernel(x_ref, y_ref, o_ref):
    # x_ref / y_ref / o_ref: VMEM f32[TR, 128].
    A = jnp.float32(_A)
    two_pi = jnp.float32(_TWO_PI)
    x = x_ref[...]
    y = y_ref[...]
    o_ref[...] = (
        2.0 * A
        + (x * x - A * jnp.cos(two_pi * x))
        + (y * y - A * jnp.cos(two_pi * y))
    )


@functools.partial(jax.jit, static_argnames=("tr",))
def rastrigin2d_batched(xs, ys, *, tr=2048):
    """Evaluate the Rastrigin objective for N candidate (x, y) points.

    tr = block rows (lane dim is fixed at 128).  tr=2048 -> 1 MiB per operand
    block, ~6 MiB double-buffered working set: fits every generation's scoped
    VMEM default (v5e 16 MiB, v6e/v7x 32 MiB).  tr is clamped to [8, 4096] and
    rounded to a multiple of 8.
    """
    xs = jnp.asarray(xs, jnp.float32)
    ys = jnp.asarray(ys, jnp.float32)
    n = xs.shape[0]

    tr = _round_up(max(_SUBLANES, min(int(tr), 4096)), _SUBLANES)

    rows = max(1, -(-n // _LANES))                 # ceil(n / 128)
    tr_eff = min(tr, _round_up(rows, _SUBLANES))   # shrink block for small n
    rows_p = _round_up(rows, tr_eff)
    n_p = rows_p * _LANES

    if n_p != n:
        pad = n_p - n
        xs = jnp.pad(xs, (0, pad))
        ys = jnp.pad(ys, (0, pad))

    x2 = xs.reshape(rows_p, _LANES)   # free reshape (row-major contiguous)
    y2 = ys.reshape(rows_p, _LANES)

    spec = pl.BlockSpec((tr_eff, _LANES), lambda i: (i, 0))
    out = pl.pallas_call(
        _rastrigin2d_batched_kernel,
        out_shape=jax.ShapeDtypeStruct((rows_p, _LANES), jnp.float32),
        grid=(rows_p // tr_eff,),
        in_specs=[spec, spec],
        out_specs=spec,
        compiler_params=pltpu.CompilerParams(
            dimension_semantics=("parallel",),   # lets v7x split steps across TCs
        ),
        cost_estimate=pl.CostEstimate(
            flops=10 * n_p,
            transcendentals=2 * n_p,
            bytes_accessed=12 * n_p,   # 2 f32 inputs + 1 f32 output per point
        ),
    )(x2, y2)
    return out.reshape(n_p)[:n]


# -----------------------------------------------------------------------------
# Pure-JAX references.
# -----------------------------------------------------------------------------
def optim2d_ref(x, y):
    A = _A
    x = jnp.asarray(x, jnp.float32)
    y = jnp.asarray(y, jnp.float32)
    return (
        A * 2.0
        + (x ** 2 - A * jnp.cos(_TWO_PI * x))
        + (y ** 2 - A * jnp.cos(_TWO_PI * y))
    )


def rastrigin2d_batched_ref(xs, ys):
    A = _A
    xs = jnp.asarray(xs, jnp.float32)
    ys = jnp.asarray(ys, jnp.float32)
    return (
        A * 2.0
        + (xs ** 2 - A * jnp.cos(_TWO_PI * xs))
        + (ys ** 2 - A * jnp.cos(_TWO_PI * ys))
    )


if __name__ == "__main__":
    key = jax.random.PRNGKey(0)
    kx, ky, kb1, kb2 = jax.random.split(key, 4)

    # Scalar parameters: module default init (3.0, 3.0) + small perturbation.
    init_x = jnp.float32(3.0) + 0.1 * jax.random.normal(kx, (), jnp.float32)
    init_y = jnp.float32(3.0) + 0.1 * jax.random.normal(ky, (), jnp.float32)

    # Forward (Pallas) vs reference.
    out = jax.block_until_ready(optim2d(init_x, init_y))
    ref = optim2d_ref(init_x, init_y)
    np.testing.assert_allclose(np.asarray(out), np.asarray(ref), rtol=1e-5, atol=1e-5)

    # Gradients (what the optimizer actually needs) via the custom VJP.
    gx, gy = jax.block_until_ready(jax.grad(optim2d, argnums=(0, 1))(init_x, init_y))
    rgx, rgy = jax.grad(optim2d_ref, argnums=(0, 1))(init_x, init_y)
    np.testing.assert_allclose(np.asarray(gx), np.asarray(rgx), rtol=1e-4, atol=1e-4)
    np.testing.assert_allclose(np.asarray(gy), np.asarray(rgy), rtol=1e-4, atol=1e-4)

    # Batched (population) evaluation.  n = 1000 is deliberately NOT a
    # multiple of 128 to exercise the pad-and-slice path.
    n = 1000
    xs = jax.random.uniform(kb1, (n,), jnp.float32, minval=-5.12, maxval=5.12)
    ys = jax.random.uniform(kb2, (n,), jnp.float32, minval=-5.12, maxval=5.12)
    bout = jax.block_until_ready(rastrigin2d_batched(xs, ys))
    bref = rastrigin2d_batched_ref(xs, ys)
    np.testing.assert_allclose(np.asarray(bout), np.asarray(bref), rtol=1e-5, atol=1e-4)

    print("KERNEL_OK")
</pallas_src>

<mosaic_0001>
module attributes {stable_mosaic.version = 11 : i64} {
  func.func @_rastrigin2d_scalar_kernel(%arg0: memref<2xf32, #tpu.memory_space<smem>>, %arg1: memref<1x1xf32, #tpu.memory_space<vmem>>) attributes {dimension_semantics = [], scalar_prefetch = 0 : i64, scratch_operands = 0 : i64, tpu.core_type = #tpu.core_type<tc>} {
    %c0 = arith.constant 0 : index
    %0 = memref.load %arg0[%c0] : memref<2xf32, #tpu.memory_space<smem>>
    %1 = vector.broadcast %0 : f32 to vector<1x1xf32>
    %c1 = arith.constant 1 : index
    %2 = memref.load %arg0[%c1] : memref<2xf32, #tpu.memory_space<smem>>
    %3 = vector.broadcast %2 : f32 to vector<1x1xf32>
    %cst = arith.constant 2.000000e+00 : f32
    %cst_0 = arith.constant 1.000000e+01 : f32
    %4 = arith.mulf %cst, %cst_0 : f32
    %5 = arith.mulf %1, %1 : vector<1x1xf32>
    %cst_1 = arith.constant 6.28318548 : f32
    %6 = vector.broadcast %cst_1 : f32 to vector<1x1xf32>
    %7 = arith.mulf %6, %1 : vector<1x1xf32>
    %8 = math.cos %7 : vector<1x1xf32>
    %cst_2 = arith.constant 1.000000e+01 : f32
    %9 = vector.broadcast %cst_2 : f32 to vector<1x1xf32>
    %10 = arith.mulf %9, %8 : vector<1x1xf32>
    %11 = arith.subf %5, %10 : vector<1x1xf32>
    %12 = vector.broadcast %4 : f32 to vector<1x1xf32>
    %13 = arith.addf %12, %11 : vector<1x1xf32>
    %14 = arith.mulf %3, %3 : vector<1x1xf32>
    %cst_3 = arith.constant 6.28318548 : f32
    %15 = vector.broadcast %cst_3 : f32 to vector<1x1xf32>
    %16 = arith.mulf %15, %3 : vector<1x1xf32>
    %17 = math.cos %16 : vector<1x1xf32>
    %cst_4 = arith.constant 1.000000e+01 : f32
    %18 = vector.broadcast %cst_4 : f32 to vector<1x1xf32>
    %19 = arith.mulf %18, %17 : vector<1x1xf32>
    %20 = arith.subf %14, %19 : vector<1x1xf32>
    %21 = arith.addf %13, %20 : vector<1x1xf32>
    %c0_5 = arith.constant 0 : index
    %c0_6 = arith.constant 0 : index
    %22 = vector.load %arg1[%c0_5, %c0_6] : memref<1x1xf32, #tpu.memory_space<vmem>>, vector<1x1xf32>
    tpu.vector_store %arg1[%c0_5, %c0_6], %21 {strides = array<i32>} : memref<1x1xf32, #tpu.memory_space<vmem>>, vector<1x1xf32>,
    return
  }
}

</mosaic_0001>

<bundles_post_ra>
// kernel: optim2d_forward.1
= control target key start
LH: loop header
LB: loop body
LE: loop exit
PB: predicated region body
PF: predicated region fallthrough
CT: control target
= control target key end

     0   :  { %6 = vsyncpa [#allocation4], 0  ;;  %s635_s0 = inlined_call_operand.vmem [shape: f32[2], index: 0, kind: input, shape index: {}]   ;;  %s636_s1 = inlined_call_operand.hbm [shape: f32[1,1], index: 1, kind: output, shape index: {}]  }
   0x1   :  { %7 = vsyncpa [#allocation3], 0  ;;  %s13_s8 = sshll.u32 %s635_s0, 4  ;;  %s419_s9 = smov [#allocation2]   ;;  %s14_s8 = int_to_ptr.vmem [resolvable:$true] %s13_s8 }
   0x2   :  { %16 = dma.vmem_to_smem %s14_s8, 16, %s419_s9, [#allocation4]  }
   0x3   :  { %415 = dma.done.wait [#allocation4], 16  }
   0x4   :  { %416 = vsyncadd [#allocation4], 4294967280 }
   0x5   :  { %21 = sfence }
   0x6   :  { %s22_s10 = sld [smem:[#allocation2]]  ;;  %v420_v25 = vmov 683565275   ;;  %v421_v27 = vmov 2475754826   ;;  %s427_s0 = smov [#allocation5]  }
   0x7   :  { %s363_s11 = sld [smem:[#allocation2 + $0x1]]  ;;  %v422_v29 = vmov 2131351028   ;;  %v423_v31 = vmov 2102212464   ;;  %s351_s12 = sshll.u32 %s427_s0, 4  ;;  %s352_s12 = int_to_ptr.vmem [resolvable:$true] %s351_s12 }
   0x8   :  { %v424_v33 = vmov 920167782   ;;  %v425_v42 = vmov 1326507024   ;;  %s353_s15 = sshll.u32 %s636_s1, 4  ;;  %s354_s15 = int_to_ptr.hbm [resolvable:$true] %s353_s15 }
   0xc   :  { %v441_v0 = vstv %s22_s10 }
   0xd   :  { %v443_v1 = vstv %s363_s11  ;;  %v446_v2 = vmul.f32 6.2831855, %v441_v0 }
   0xe   :  { %v449_v3 = vmul.f32 6.2831855, %v443_v1 }
   0xf   :  { %v28_v4 = vand.u32 2147483647, %v446_v2  ;;  %v31_v5 = vand.u32 2139095040, %v446_v2 }
  0x10   :  { %v187_v6 = vand.u32 2147483647, %v449_v3  ;;  %v190_v7 = vand.u32 2139095040, %v449_v3 }
  0x11   :  { %v32_v8 = vshrl.u32 %v31_v5, 23  ;;  %v35_v9 = vand.u32 8388607, %v28_v4 }
  0x12   :  { %v191_v10 = vshrl.u32 %v190_v7, 23  ;;  %v194_v14 = vand.u32 8388607, %v187_v6 }
  0x13   :  { %v364_v11 = vadd.s32 4294967169, %v32_v8  ;;  %v36_v12 = vor.u32 8388608, %v35_v9 }
  0x14   :  { %v367_v13 = vadd.s32 4294967169, %v191_v10  ;;  %v195_v19 = vor.u32 8388608, %v194_v14 }
  0x15   :  { %v38_v15 = vadd.s32 1, %v364_v11  ;;  %v459_v18 = vshll.u32 %v36_v12, 8 }
  0x16   :  { %v197_v16 = vadd.s32 1, %v367_v13  ;;  %v469_v36 = vshll.u32 %v195_v19, 8 }
  0x17   :  { %vm39_vm0 = vcmp.gt.s32.totalorder %v38_v15, 0  ;;  %v77_v35 = vand.u32 65535, %v459_v18  ;;  %v78_v40 = vshrl.u32 %v459_v18, 16 }
  0x18   :  { %v40_v17 = vsel %vm39_vm0, %v38_v15, 0  ;;  %vm198_vm1 = vcmp.gt.s32.totalorder %v197_v16, 0 }
  0x19   :  { %v42_v20 = vand.u32 31, %v40_v17  ;;  %v199_v21 = vsel %vm198_vm1, %v197_v16, 0  ;;  %v461_v22 = vshrl.u32 %v40_v17, 5 }
  0x1a   :  { %v463_v23 = vand.u32 31, %v199_v21  ;;  %v487_v53 = vshrl.u32 %v199_v21, 5 }
  0x1b   :  { %v43_v24 = vsub.s32 32, %v42_v20  ;;  %v45_v26 = vshll.u32 %v420_v25, %v42_v20  ;;  %v48_v28 = vshll.u32 %v421_v27, %v42_v20  ;;  %v51_v30 = vshll.u32 %v422_v29, %v42_v20 }
  0x1c   :  { %v54_v32 = vshll.u32 %v423_v31, %v42_v20  ;;  %v57_v34 = vshll.u32 %v424_v33, %v42_v20  ;;  %vm60_vm2 = vcmp.lt.s32.totalorder %v461_v22, 1  ;;  %vm63_vm3 = vcmp.lt.s32.totalorder %v461_v22, 4 }
  0x1d   :  { %v46_v37 = vshrl.u32 %v421_v27, %v43_v24  ;;  %v49_v38 = vshrl.u32 %v422_v29, %v43_v24  ;;  %v52_v39 = vshrl.u32 %v423_v31, %v43_v24  ;;  %v55_v41 = vshrl.u32 %v424_v33, %v43_v24 }
  0x1e   :  { %v58_v43 = vshrl.u32 %v425_v42, %v43_v24  ;;  %v478_v47 = vsub.s32 32, %v463_v23  ;;  %v44_v48 = vshrl.u32 %v420_v25, %v43_v24  ;;  %vm62_vm4 = vcmp.lt.s32.totalorder %v461_v22, 3 }
  0x1f   :  { %v47_v44 = vor.u32 %v46_v37, %v45_v26  ;;  %v50_v45 = vor.u32 %v49_v38, %v48_v28  ;;  %v53_v46 = vor.u32 %v52_v39, %v51_v30  ;;  %v56_v49 = vor.u32 %v55_v41, %v54_v32 }
  0x20   :  { %v59_v50 = vor.u32 %v58_v43, %v57_v34  ;;  %vm61_vm5 = vcmp.lt.s32.totalorder %v461_v22, 2  ;;  %v204_v56 = vshll.u32 %v420_v25, %v463_v23  ;;  %v207_v57 = vshll.u32 %v421_v27, %v463_v23 }
  0x21   :  { %v68_v51 = vsel %vm60_vm2, %v47_v44, %v50_v45  ;;  %v72_v52 = vsel %vm60_vm2, %v50_v45, %v53_v46  ;;  %v69_v54 = vsel %vm63_vm3, %v56_v49, 920167782  ;;  %v65_v58 = vsel %vm63_vm3, %v53_v46, 2102212464 }
  0x22   :  { %v73_v55 = vsel %vm63_vm3, %v59_v50, 1326507024  ;;  %v70_v59 = vsel %vm62_vm4, %v53_v46, %v69_v54  ;;  %v205_v61 = vshrl.u32 %v421_v27, %v478_v47  ;;  %v64_v62 = vsel %vm60_vm2, %v44_v48, %v47_v44 }
  0x23   :  { %v74_v60 = vsel %vm62_vm4, %v56_v49, %v73_v55  ;;  %v71_v63 = vsel %vm61_vm5, %v68_v51, %v70_v59  ;;  %v208_v7 = vshrl.u32 %v422_v29, %v478_v47  ;;  %v66_v12 = vsel %vm62_vm4, %v50_v45, %v65_v58 }
  0x24   :  { %v75_v5 = vsel %vm61_vm5, %v72_v52, %v74_v60  ;;  %v101_v10 = vand.u32 65535, %v71_v63  ;;  %v102_v11 = vshrl.u32 %v71_v63, 16  ;;  %v512_v13 = vor.u32 %v205_v61, %v204_v56 }
  0x25   :  { %v79_v8 = vand.u32 65535, %v75_v5  ;;  %v80_v9 = vshrl.u32 %v75_v5, 16  ;;  %v514_v14 = vor.u32 %v208_v7, %v207_v57  ;;  %v210_v15 = vshll.u32 %v422_v29, %v463_v23 }
  0x26   :  { %v211_v20 = vshrl.u32 %v423_v31, %v478_v47  ;;  %v103_v24 = vmul.u32 %v101_v10, %v77_v35  ;;  %v104_v26 = vmul.u32 %v102_v11, %v77_v35  ;;  %v105_v27 = vmul.u32 %v101_v10, %v78_v40 }
  0x27   :  { %v81_v16 = vmul.u32 %v79_v8, %v77_v35  ;;  %v82_v17 = vmul.u32 %v80_v9, %v77_v35  ;;  %v83_v19 = vmul.u32 %v79_v8, %v78_v40  ;;  %v84_v21 = vmul.u32 %v80_v9, %v78_v40 }
  0x28   :  { %v106_v34 = vmul.u32 %v102_v11, %v78_v40  ;;  %v107_v38 = vshll.u32 %v104_v26, 16  ;;  %v108_v39 = vshrl.u32 %v104_v26, 16  ;;  %v109_v41 = vshll.u32 %v105_v27, 16 }
  0x29   :  { %v85_v28 = vshll.u32 %v82_v17, 16  ;;  %v86_v30 = vshrl.u32 %v82_v17, 16  ;;  %v87_v32 = vshll.u32 %v83_v19, 16  ;;  %v88_v37 = vshrl.u32 %v83_v19, 16 }
  0x2a   :  { %v110_v43 = vshrl.u32 %v105_v27, 16  ;;  %v213_v44 = vshll.u32 %v423_v31, %v463_v23  ;;  %v426_v45 = vmov 0   ;;  %vm111_vm7 = vc.u32 %v103_v24, %v107_v38 }
  0x2b   :  { %vm89_vm6 = vc.u32 %v81_v16, %v85_v28  ;;  %v91_v29 = vadd.s32 %v85_v28, %v81_v16  ;;  %v113_v35 = vadd.s32 %v107_v38, %v103_v24  ;;  %v214_v48 = vshrl.u32 %v424_v33, %v478_v47 }
  0x2c   :  { %v90_v46 = vsel %vm89_vm6, 1, %v426_v45  ;;  %v112_v40 = vsel %vm111_vm7, 1, %v426_v45  ;;  %v216_v50 = vshll.u32 %v424_v33, %v463_v23  ;;  %v212_v31 = vor.u32 %v211_v20, %v210_v15 }
  0x2d   :  { %v92_v49 = vadd.s32 %v90_v46, %v84_v21  ;;  %vm93_vm8 = vc.u32 %v91_v29, %v87_v32  ;;  %v114_v52 = vadd.s32 %v112_v40, %v106_v34  ;;  %vm115_vm9 = vc.u32 %v113_v35, %v109_v41 }
  0x2e   :  { %v94_v51 = vsel %vm93_vm8, 1, %v426_v45  ;;  %v116_v55 = vsel %vm115_vm9, 1, %v426_v45  ;;  %v215_v56 = vor.u32 %v214_v48, %v213_v44  ;;  %v217_v57 = vshrl.u32 %v425_v42, %v478_v47 }
  0x2f   :  { %v96_v54 = vadd.s32 %v94_v51, %v92_v49  ;;  %v531_v58 = vadd.s32 %v113_v35, %v109_v41  ;;  %v118_v59 = vadd.s32 %v116_v55, %v114_v52  ;;  %vm219_vm10 = vcmp.lt.s32.totalorder %v487_v53, 1 }
  0x30   :  { %vm221_vm11 = vcmp.lt.s32.totalorder %v487_v53, 3  ;;  %v218_v33 = vor.u32 %v217_v57, %v216_v50  ;;  %vm220_vm12 = vcmp.lt.s32.totalorder %v487_v53, 2  ;;  %vm222_vm13 = vcmp.lt.s32.totalorder %v487_v53, 4 }
  0x31   :  { %v97_v23 = vadd.s32 %v96_v54, %v86_v30  ;;  %v67_v60 = vsel %vm61_vm5, %v64_v62, %v66_v12  ;;  %v119_v61 = vadd.s32 %v118_v59, %v108_v39  ;;  %v227_v42 = vsel %vm219_vm10, %v512_v13, %v514_v14 }
  0x32   :  { %v228_v63 = vsel %vm222_vm13, %v215_v56, 920167782  ;;  %v231_v8 = vsel %vm219_vm10, %v514_v14, %v212_v31  ;;  %v236_v22 = vand.u32 65535, %v469_v36  ;;  %v232_v10 = vsel %vm222_vm13, %v218_v33, 1326507024 }
  0x33   :  { %v545_v5 = vadd.s32 %v97_v23, %v88_v37  ;;  %v229_v7 = vsel %vm221_vm11, %v212_v31, %v228_v63  ;;  %v120_v62 = vadd.s32 %v119_v61, %v110_v43  ;;  %v237_v11 = vshrl.u32 %v469_v36, 16 }
  0x34   :  { %v230_v9 = vsel %vm220_vm12, %v227_v42, %v229_v7  ;;  %v121_v12 = vmul.u32 %v459_v18, %v67_v60  ;;  %v233_v15 = vsel %vm221_vm11, %v215_v56, %v232_v10  ;;  %v203_v21 = vshrl.u32 %v420_v25, %v478_v47 }
  0x35   :  { %vm123_vm14 = vc.u32 %v545_v5, %v531_v58  ;;  %v260_v16 = vand.u32 65535, %v230_v9  ;;  %v124_v17 = vadd.s32 1, %v120_v62  ;;  %v234_v19 = vsel %vm220_vm12, %v231_v8, %v233_v15 }
  0x36   :  { %v261_v20 = vshrl.u32 %v230_v9, 16  ;;  %v238_v24 = vand.u32 65535, %v234_v19  ;;  %v239_v26 = vshrl.u32 %v234_v19, 16  ;;  %v224_v29 = vsel %vm222_vm13, %v212_v31, 2102212464 }
  0x37   :  { %v125_v27 = vsel %vm123_vm14, %v124_v17, %v120_v62  ;;  %v262_v28 = vmul.u32 %v260_v16, %v236_v22  ;;  %v264_v30 = vmul.u32 %v260_v16, %v237_v11  ;;  %v223_v25 = vsel %vm219_vm10, %v203_v21, %v512_v13 }
  0x38   :  { %v263_v18 = vmul.u32 %v261_v20, %v236_v22  ;;  %v126_v32 = vadd.s32 %v125_v27, %v121_v12  ;;  %v240_v34 = vmul.u32 %v238_v24, %v236_v22  ;;  %v241_v37 = vmul.u32 %v239_v26, %v236_v22 }
  0x39   :  { %v242_v38 = vmul.u32 %v238_v24, %v237_v11  ;;  %v243_v43 = vmul.u32 %v239_v26, %v237_v11  ;;  %v265_v46 = vmul.u32 %v261_v20, %v237_v11  ;;  %v268_v35 = vshll.u32 %v264_v30, 16 }
  0x3a   :  { %v266_v39 = vshll.u32 %v263_v18, 16  ;;  %v127_v41 = vadd.s32 536870912, %v126_v32  ;;  %v244_v44 = vshll.u32 %v241_v37, 16  ;;  %v225_v40 = vsel %vm221_vm11, %v514_v14, %v224_v29 }
  0x3b   :  { %v246_v47 = vshll.u32 %v242_v38, 16  ;;  %v245_v13 = vshrl.u32 %v241_v37, 16  ;;  %v267_v56 = vshrl.u32 %v263_v18, 16  ;;  %v247_v23 = vshrl.u32 %v242_v38, 16 }
  0x3c   :  { %v572_v48 = vshrl.u32 %v127_v41, 30  ;;  %vm248_vm15 = vc.u32 %v240_v34, %v244_v44  ;;  %v250_v49 = vadd.s32 %v244_v44, %v240_v34  ;;  %vm270_vm0 = vc.u32 %v262_v28, %v266_v39 }
  0x3d   :  { %v249_v50 = vsel %vm248_vm15, 1, %v426_v45  ;;  %v271_v51 = vsel %vm270_vm0, 1, %v426_v45  ;;  %v272_v52 = vadd.s32 %v266_v39, %v262_v28  ;;  %v269_v60 = vshrl.u32 %v264_v30, 16 }
  0x3e   :  { %v129_v31 = vshll.u32 %v572_v48, 30  ;;  %v251_v54 = vadd.s32 %v249_v50, %v243_v43  ;;  %vm252_vm1 = vc.u32 %v250_v49, %v246_v47  ;;  %v273_v57 = vadd.s32 %v271_v51, %v265_v46 }
  0x3f   :  { %v253_v55 = vsel %vm252_vm1, 1, %v426_v45  ;;  %vm274_vm2 = vc.u32 %v272_v52, %v268_v35  ;;  %v276_v7 = vadd.s32 %v272_v52, %v268_v35  ;;  %v226_v8 = vsel %vm220_vm12, %v223_v25, %v225_v40 }
  0x40   :  { %v130_v59 = vsub.s32 %v126_v32, %v129_v31  ;;  %v255_v33 = vadd.s32 %v253_v55, %v251_v54  ;;  %v275_v14 = vsel %vm274_vm2, 1, %v426_v45  ;;  %v280_v12 = vmul.u32 %v469_v36, %v226_v8 }
  0x41   :  { %v277_v61 = vadd.s32 %v275_v14, %v273_v57  ;;  %v122_v45 = vadd.s32 %v531_v58, %v545_v5  ;;  %vm30_vm7 = vcmp.lt.s32.totalorder %v446_v2, 0  ;;  %vm593_vm8 = vcmp.le.f32.partialorder %v28_v4, 0.7853982 }
  0x42   :  { %vm131_vm3 = vcmp.lt.s32.totalorder %v130_v59, 0  ;;  %v132_v42 = vsub.s32 0, %v130_v59  ;;  %v256_v63 = vadd.s32 %v255_v33, %v245_v13  ;;  %v152_v57 = vsub.s32 4, %v572_v48 }
  0x43   :  { %v278_v22 = vadd.s32 %v277_v61, %v267_v56  ;;  %vm189_vm10 = vcmp.lt.s32.totalorder %v449_v3, 0  ;;  %vm611_vm11 = vcmp.le.f32.partialorder %v187_v6, 0.7853982  ;;  %vm171_vm15 = vweird.f32 %v446_v2 }
  0x44   :  { %v133_v62 = vsel %vm131_vm3, %v132_v42, %v130_v59  ;;  %v257_v9 = vadd.s32 %v256_v63, %v247_v23  ;;  %vm330_vm3 = vweird.f32 %v449_v3 }
  0x45   :  { %v134_v10 = vclz %v133_v62  ;;  %v279_v11 = vadd.s32 %v278_v22, %v269_v60 }
  0x46   :  { %vm282_vm4 = vc.u32 %v257_v9, %v276_v7  ;;  %v281_v49 = vadd.s32 %v276_v7, %v257_v9  ;;  %v153_v7 = vsel %vm30_vm7, %v152_v57, %v572_v48 }
  0x47   :  { %v365_v15 = vadd.s32 4294967294, %v134_v10  ;;  %v283_v16 = vadd.s32 1, %v279_v11  ;;  %v155_v10 = vsel %vm593_vm8, 0, %v153_v7 }
  0x48   :  { %v172_v48 = vand.u32 3, %v155_v10 }
  0x49   :  { %vm366_vm5 = vcmp.lt.s32.totalorder %v365_v15, 0  ;;  %v284_v17 = vsel %vm282_vm4, %v283_v16, %v279_v11  ;;  %vm344_vm4 = vcmask 0  }
  0x4a   :  { %v137_v19 = vsel %vm366_vm5, 0, %v365_v15  ;;  %v285_v20 = vadd.s32 %v284_v17, %v280_v12  ;;  %vm174_vm12 = vcmp.eq.s32.totalorder %v172_v48, 0  ;;  %vm177_vm13 = vcmp.eq.s32.totalorder %v172_v48, 2 }
  0x4b   :  { %v138_v21 = vsub.s32 32, %v137_v19  ;;  %v139_v53 = vshll.u32 %v130_v59, %v137_v19  ;;  %v142_v24 = vsub.s32 4294967266, %v137_v19  ;;  %vm173_vm14 = vcmp.lt.s32.totalorder %v172_v48, 2 }
  0x4c   :  { %v286_v26 = vadd.s32 536870912, %v285_v20 }
  0x4d   :  { %v140_v27 = vshrl.u32 %v122_v45, %v138_v21  ;;  %v143_v28 = vadd.s32 127, %v142_v24 }
  0x4e   :  { %v587_v18 = vshrl.u32 %v286_v26, 30 }
  0x4f   :  { %v141_v30 = vor.u32 %v140_v27, %v139_v53  ;;  %v144_v36 = vshll.u32 %v143_v28, 23 }
  0x50   :  { %v288_v32 = vshll.u32 %v587_v18, 30  ;;  %v311_v19 = vsub.s32 4, %v587_v18 }
  0x51   :  { %v145_v34 = vor.u32 4788187, %v144_v36  ;;  %v148_v37 = vcvt.s32.f32 %v141_v30 }
  0x52   :  { %v289_v38 = vsub.s32 %v285_v20, %v288_v32  ;;  %v312_v27 = vsel %vm189_vm10, %v311_v19, %v587_v18 }
  0x53   :  { %v146_v58 = vand.u32 2147483647, %v145_v34  ;;  %v314_v34 = vsel %vm611_vm11, 0, %v312_v27 }
  0x54   :  { %vm290_vm6 = vcmp.lt.s32.totalorder %v289_v38, 0  ;;  %v291_v5 = vsub.s32 0, %v289_v38 }
  0x55   :  { %v149_v39 = vmul.f32 %v148_v37, %v146_v58 }
  0x56   :  { %v292_v41 = vsel %vm290_vm6, %v291_v5, %v289_v38 }
  0x57   :  { %v150_v43 = vxor.u32 2147483648, %v149_v39  ;;  %v293_v44 = vclz %v292_v41  ;;  %v331_v41 = vand.u32 3, %v314_v34 }
  0x59   :  { %v151_v25 = vsel %vm30_vm7, %v150_v43, %v149_v39  ;;  %v368_v47 = vadd.s32 4294967294, %v293_v44  ;;  %vm336_vm0 = vcmp.eq.s32.totalorder %v331_v41, 2  ;;  %vm333_vm1 = vcmp.eq.s32.totalorder %v331_v41, 0 }
  0x5a   :  { %v154_v46 = vsel %vm593_vm8, %v446_v2, %v151_v25  ;;  %vm332_vm2 = vcmp.lt.s32.totalorder %v331_v41, 2 }
  0x5b   :  { %v156_v35 = vmul.f32 %v154_v46, %v154_v46  ;;  %vm369_vm9 = vcmp.lt.s32.totalorder %v368_v47, 0 }
  0x5c   :  { %v296_v40 = vsel %vm369_vm9, 0, %v368_v47  ;;  %v26_v47 = vmul.f32 %v441_v0, %v441_v0 }
  0x5d   :  { %v157_v50 = vmul.f32 -0.001358992, %v156_v35  ;;  %v164_v51 = vmul.f32 -0.00019511016, %v156_v35  ;;  %v297_v4 = vsub.s32 32, %v296_v40  ;;  %v298_v52 = vshll.u32 %v289_v38, %v296_v40 }
  0x5e   :  { %v301_v31 = vsub.s32 4294967266, %v296_v40 }
  0x5f   :  { %v158_v13 = vadd.f32 0.041655596, %v157_v50  ;;  %v165_v54 = vadd.f32 0.008332121, %v164_v51  ;;  %v299_v55 = vshrl.u32 %v281_v49, %v297_v4  ;;  %v185_v4 = vmul.f32 %v443_v1, %v443_v1 }
  0x60   :  { %v302_v56 = vadd.s32 127, %v301_v31 }
  0x61   :  { %v159_v59 = vmul.f32 %v158_v13, %v156_v35  ;;  %v166_v23 = vmul.f32 %v165_v54, %v156_v35  ;;  %v300_v33 = vor.u32 %v299_v55, %v298_v52 }
  0x62   :  { %v303_v14 = vshll.u32 %v302_v56, 23 }
  0x63   :  { %v160_v60 = vadd.f32 -0.4999988, %v159_v59  ;;  %v167_v61 = vadd.f32 -0.16666654, %v166_v23  ;;  %v307_v63 = vcvt.s32.f32 %v300_v33 }
  0x64   :  { %v304_v42 = vor.u32 4788187, %v303_v14 }
  0x65   :  { %v168_v8 = vmul.f32 %v167_v61, %v156_v35  ;;  %v161_v22 = vmul.f32 %v160_v60, %v156_v35 }
  0x66   :  { %v305_v62 = vand.u32 2147483647, %v304_v42 }
  0x67   :  { %v169_v9 = vadd.f32 1.0, %v168_v8  ;;  %v162_v12 = vadd.f32 1.0, %v161_v22 }
  0x68   :  { %v308_v11 = vmul.f32 %v307_v63, %v305_v62 }
  0x69   :  { %v170_v15 = vmul.f32 %v169_v9, %v154_v46  ;;  %v178_v53 = vxor.u32 2147483648, %v162_v12 }
  0x6a   :  { %v309_v45 = vxor.u32 2147483648, %v308_v11 }
  0x6b   :  { %v175_v21 = vxor.u32 2147483648, %v170_v15  ;;  %v179_v30 = vsel %vm177_vm13, %v178_v53, %v170_v15 }
  0x6c   :  { %v310_v17 = vsel %vm189_vm10, %v309_v45, %v308_v11 }
  0x6d   :  { %v313_v20 = vsel %vm611_vm11, %v449_v3, %v310_v17  ;;  %v176_v28 = vsel %vm174_vm12, %v162_v12, %v175_v21 }
  0x6e   :  { %v315_v24 = vmul.f32 %v313_v20, %v313_v20  ;;  %v180_v58 = vsel %vm173_vm14, %v176_v28, %v179_v30 }
  0x6f   :  { %v181_v29 = vsel %vm171_vm15, nan, %v180_v58 }
  0x70   :  { %v316_v6 = vmul.f32 -0.001358992, %v315_v24  ;;  %v323_v26 = vmul.f32 -0.00019511016, %v315_v24  ;;  %v182_v46 = vmul.f32 10.0, %v181_v29 }
  0x72   :  { %v317_v36 = vadd.f32 0.041655596, %v316_v6  ;;  %v324_v32 = vadd.f32 0.008332121, %v323_v26  ;;  %v183_v50 = vsub.f32 %v26_v47, %v182_v46 }
  0x74   :  { %v318_v37 = vmul.f32 %v317_v36, %v315_v24  ;;  %v325_v38 = vmul.f32 %v324_v32, %v315_v24  ;;  %v184_v13 = vadd.f32 20.0, %v183_v50 }
  0x76   :  { %v319_v5 = vadd.f32 -0.4999988, %v318_v37  ;;  %v326_v39 = vadd.f32 -0.16666654, %v325_v38 }
  0x78   :  { %v320_v43 = vmul.f32 %v319_v5, %v315_v24  ;;  %v327_v44 = vmul.f32 %v326_v39, %v315_v24 }
  0x7a   :  { %v321_v25 = vadd.f32 1.0, %v320_v43  ;;  %v328_v18 = vadd.f32 1.0, %v327_v44 }
  0x7c   :  { %v329_v35 = vmul.f32 %v328_v18, %v313_v20  ;;  %v337_v49 = vxor.u32 2147483648, %v321_v25 }
  0x7e   :  { %v334_v40 = vxor.u32 2147483648, %v329_v35  ;;  %v338_v2 = vsel %vm336_vm0, %v337_v49, %v329_v35 }
  0x80   :  { %v335_v51 = vsel %vm333_vm1, %v321_v25, %v334_v40 }
  0x81   :  { %v339_v52 = vsel %vm332_vm2, %v335_v51, %v338_v2 }
  0x82   :  { %v340_v31 = vsel %vm330_vm3, nan, %v339_v52 }
  0x83   :  { %v341_v54 = vmul.f32 10.0, %v340_v31 }
  0x85   :  { %v342_v0 = vsub.f32 %v185_v4, %v341_v54 }
  0x87   :  { %v343_v55 = vadd.f32 %v342_v0, %v184_v13 }
  0x89   :  { %345 = vst.msk [vmem:[#allocation5] sm:$0x1] %vm344_vm4, %v343_v55 }
  0x8a   :  { %356 = dma.vmem_to_hbm [thread:$0]  %s352_s12, 16, %s354_s15, [#allocation3]  }
  0x8b   :  { %417 = dma.done.wait [#allocation3], 16  }
  0x8c   :  { %418 = vsyncadd [#allocation3], 4294967280 }
  0x8d   :  { %361 = vsyncpa [#allocation3], 1 }
  0x8e   :  { %362 = vsyncpa [#allocation4], 1 }

</bundles_post_ra>
